<compile_context>
chip_gen: v5e
topology: v5e:2x2
jax: 0.10.0
libtpu: 0.0.40
codegen_flags: <defaults>
</compile_context>

<pallas_src>
import functools

import jax
import jax.numpy as jnp
from jax.experimental import pallas as pl
from jax.experimental.pallas import tpu as pltpu

LANE = 128


def _round_up(n, m):
    return ((n + m - 1) // m) * m


def linear_classifier_kernel(x_ref, w_ref, b_ref, out_ref):
    # Single fused linear: out = x @ W_fused + b_fused.
    # W_fused arrives pre-fused/pre-padded/pre-cast to bf16; accumulate in f32,
    # bias add + store in f32 (v5e-safe).
    x_bf = x_ref[...].astype(jnp.bfloat16)
    out = jnp.dot(x_bf, w_ref[...], preferred_element_type=jnp.float32)
    out = out + b_ref[...]
    out_ref[...] = out.astype(out_ref.dtype)


def prepare_params(w_enc, b_enc, w_fc, b_fc):
    """One-time parameter prep.

    PyTorch nn.Linear stores weights as [out, in].  Fold the two linears:
        W_fused = We^T @ Wf^T  -> [D_in, C]   (f32 compose, then ONE bf16 cast)
        b_fused = be @ Wf^T + bf -> [1, C]    (kept f32)
    and zero-pad the class (lane) dim to a multiple of 128.
    """
    F, D_in = w_enc.shape
    C = w_fc.shape[0]
    C_pad = _round_up(C, LANE)

    w_enc = jnp.asarray(w_enc, jnp.float32)
    b_enc = jnp.asarray(b_enc, jnp.float32)
    w_fc = jnp.asarray(w_fc, jnp.float32)
    b_fc = jnp.asarray(b_fc, jnp.float32)

    # Exact f32 composition of the two bias-free linear maps, one bf16 rounding.
    w_fused_f32 = w_enc.T @ w_fc.T                     # [D_in, C]
    b_fused_f32 = (b_enc @ w_fc.T + b_fc).reshape(1, C)  # [1, C]

    w_fused = jnp.zeros((D_in, C_pad), jnp.bfloat16)
    w_fused = w_fused.at[:, :C].set(w_fused_f32.astype(jnp.bfloat16))

    b_fused = jnp.zeros((1, C_pad), jnp.float32)
    b_fused = b_fused.at[:, :C].set(b_fused_f32)

    return w_fused, b_fused


@functools.partial(jax.jit, static_argnames=("num_classes",))
def linear_classifier_forward(x, w_fused, b_fused, *, num_classes):
    """x: [B, D_in] f32; params already prepared by prepare_params()."""
    B, D_in = x.shape
    C_pad = w_fused.shape[1]

    flops = 2 * B * D_in * C_pad
    bytes_accessed = (
        B * D_in * 4          # x (f32 in)
        + D_in * C_pad * 2    # W_fused (bf16)
        + C_pad * 4           # b_fused (f32)
        + B * C_pad * 4       # padded output (f32)
    )

    out_padded = pl.pallas_call(
        linear_classifier_kernel,
        out_shape=jax.ShapeDtypeStruct((B, C_pad), jnp.float32),
        in_specs=[
            pl.BlockSpec(memory_space=pltpu.MemorySpace.VMEM),  # x
            pl.BlockSpec(memory_space=pltpu.MemorySpace.VMEM),  # W_fused
            pl.BlockSpec(memory_space=pltpu.MemorySpace.VMEM),  # b_fused
        ],
        out_specs=pl.BlockSpec(memory_space=pltpu.MemorySpace.VMEM),
        cost_estimate=pl.CostEstimate(
            flops=flops, transcendentals=0, bytes_accessed=bytes_accessed),
    )(x, w_fused, b_fused)

    # Slice the lane padding back off outside the kernel (fuses under jit;
    # keeps the in-kernel store full-width/unmasked).
    return out_padded[:, :num_classes]


if __name__ == "__main__":
    # Small shapes consistent with the module's forward:
    # batch=8, input dim=32, feature_dim=64, num_classes=10.
    B, D_IN, FEATURE_DIM, NUM_CLASSES = 8, 32, 64, 10

    key = jax.random.PRNGKey(0)
    kx, k1, k2, k3, k4 = jax.random.split(key, 5)

    x = jax.random.normal(kx, (B, D_IN), dtype=jnp.float32)

    # Deterministic synthetic parameters in PyTorch nn.Linear layout [out, in].
    w_enc = jax.random.normal(k1, (FEATURE_DIM, D_IN), dtype=jnp.float32) * 0.05
    b_enc = jax.random.normal(k2, (FEATURE_DIM,), dtype=jnp.float32) * 0.05
    w_fc = jax.random.normal(k3, (NUM_CLASSES, FEATURE_DIM), dtype=jnp.float32) * 0.05
    b_fc = jax.random.normal(k4, (NUM_CLASSES,), dtype=jnp.float32) * 0.05

    # One-time parameter prep (layer fusion hoisted out of the forward path).
    w_fused, b_fused = prepare_params(w_enc, b_enc, w_fc, b_fc)

    out = linear_classifier_forward(x, w_fused, b_fused,
                                    num_classes=NUM_CLASSES)
    out = jax.block_until_ready(out)

    # Reference: the original two-stage module math in plain f32 JAX.
    feats_ref = x @ w_enc.T + b_enc
    out_ref = feats_ref @ w_fc.T + b_fc
    assert out.shape == (B, NUM_CLASSES)
    assert jnp.allclose(out, out_ref, atol=2e-2, rtol=2e-2), (
        float(jnp.max(jnp.abs(out - out_ref))))

    print("KERNEL_OK")
</pallas_src>

<mosaic_0001>
module attributes {stable_mosaic.version = 11 : i64} {
  func.func @linear_classifier_kernel(%arg0: memref<8x32xf32, #tpu.memory_space<vmem>>, %arg1: memref<32x128xbf16, #tpu.memory_space<vmem>>, %arg2: memref<1x128xf32, #tpu.memory_space<vmem>>, %arg3: memref<8x128xf32, #tpu.memory_space<vmem>>) attributes {dimension_semantics = [], scalar_prefetch = 0 : i64, scratch_operands = 0 : i64, tpu.core_type = #tpu.core_type<tc>} {
    %c0 = arith.constant 0 : index
    %c0_0 = arith.constant 0 : index
    %0 = vector.load %arg0[%c0, %c0_0] : memref<8x32xf32, #tpu.memory_space<vmem>>, vector<8x32xf32>
    %1 = arith.truncf %0 : vector<8x32xf32> to vector<8x32xbf16>
    %c0_1 = arith.constant 0 : index
    %c0_2 = arith.constant 0 : index
    %2 = vector.load %arg1[%c0_1, %c0_2] : memref<32x128xbf16, #tpu.memory_space<vmem>>, vector<32x128xbf16>
    %cst = arith.constant dense<0.000000e+00> : vector<8x128xf32>
    %3 = tpu.matmul %1, %2, %cst {dimension_numbers = #tpu.dot_dimension_numbers<[1], [0], [0], [1], [0, 0, 1, 1], [], []>} : vector<8x32xbf16>, vector<32x128xbf16>, vector<8x128xf32> -> vector<8x128xf32>
    %c0_3 = arith.constant 0 : index
    %c0_4 = arith.constant 0 : index
    %4 = vector.load %arg2[%c0_3, %c0_4] : memref<1x128xf32, #tpu.memory_space<vmem>>, vector<1x128xf32>
    %5 = vector.broadcast %4 : vector<1x128xf32> to vector<8x128xf32>
    %6 = arith.addf %3, %5 : vector<8x128xf32>
    %c0_5 = arith.constant 0 : index
    %c0_6 = arith.constant 0 : index
    %7 = vector.load %arg3[%c0_5, %c0_6] : memref<8x128xf32, #tpu.memory_space<vmem>>, vector<8x128xf32>
    tpu.vector_store %arg3[%c0_5, %c0_6], %6 {strides = array<i32>} : memref<8x128xf32, #tpu.memory_space<vmem>>, vector<8x128xf32>,
    return
  }
}

</mosaic_0001>

<bundles_post_ra>
// kernel: linear_classifier_forward.1
= control target key start
LH: loop header
LB: loop body
LE: loop exit
PB: predicated region body
PF: predicated region fallthrough
CT: control target
= control target key end

     0   :  { %8 = vsyncpa [#allocation3], 0  ;;  %s236_s0 = inlined_call_operand.hbm [shape: f32[8,32], index: 0, kind: input, shape index: {}]   ;;  %s237_s1 = inlined_call_operand.hbm [shape: bf16[32,128], index: 1, kind: input, shape index: {}]   ;;  %s238_s2 = inlined_call_operand.vmem [shape: f32[1,128], index: 2, kind: input, shape index: {}]   ;;  %s239_s3 = inlined_call_operand.hbm [shape: f32[8,128], index: 3, kind: output, shape index: {}]  }
   0x1   :  { %9 = vsyncpa [#allocation6], 0 }
   0x2   :  { %10 = vsyncpa [#allocation4], 0  ;;  %s16_s14 = sshll.u32 %s236_s0, 4  ;;  %s199_s15 = smov [#allocation2]   ;;  %s17_s14 = int_to_ptr.hbm [resolvable:$true] %s16_s14 }
   0x3   :  { %s18_s16 = sshll.u32 %s199_s15, 4  ;;  %s26_s19 = sshll.u32 %s237_s1, 4  ;;  %s19_s16 = int_to_ptr.vmem [resolvable:$true] %s18_s16  ;;  %s27_s19 = int_to_ptr.hbm [resolvable:$true] %s26_s19 }
   0x4   :  { %21 = dma.hbm_to_vmem [thread:$0]  %s17_s14, 128, %s19_s16, [#allocation3]  }
   0x5   :  { %s200_s20 = smov [#allocation5]   ;;  %s201_s22 = smov 64  }
   0x6   :  { %s28_s21 = sshll.u32 %s200_s20, 4  ;;  %s202_s23 = smov 4   ;;  %s29_s21 = int_to_ptr.vmem [resolvable:$true] %s28_s21 }
   0x7   :  { %34 = dma.hbm_to_vmem [thread:$0]  %s27_s19, 256, %s29_s21, [#allocation6], %s201_s22, %s201_s22, %s202_s23  }
   0x8   :  { %193 = dma.done.wait [#allocation3], 128  }
   0x9   :  { %194 = vsyncadd [#allocation3], 4294967168 }
   0xa   :  { %195 = dma.done.wait [#allocation6], 256  }
   0xb   :  { %196 = vsyncadd [#allocation6], 4294967040  ;;  %v114_v0 = vld [vmem:[#allocation5 + $0x8] sm:$0xff]  ;;  %v113_v1 = vld [vmem:[#allocation5] sm:$0xff]  ;;  %vm68_vm0 = vcmask 261120   ;;  %s203_s24 = smov [#allocation7]  }
   0xc   :  { %78 = vmatpush.bf16.msra.mxu0 %v114_v0  ;;  %v46_v2 = vld [vmem:[#allocation2] sm:$0xff]  ;;  %s91_s25 = sshll.u32 %s203_s24, 4  ;;  %s93_s28 = sshll.u32 %s239_s3, 4  ;;  %s92_s25 = int_to_ptr.vmem [resolvable:$true] %s91_s25  ;;  %s94_s28 = int_to_ptr.hbm [resolvable:$true] %s93_s28 }
   0xd   :  { %v47_v3 = vpack.c.bf16 %v46_v2, %v46_v2  ;;  %v120_v4 = vld [vmem:[%s238_s2] ss:$0 sm:$0xff] }
  0x10   :  { %79 = vmatpush.bf16.msra.mxu0 %v113_v1 }
  0x13   :  { %112 = vmatmul.msk.bf16.vlgmr.msra.gmra.mxu0 %vm68_vm0, %v47_v3 }
  0x90   :  { %v81_v5 = vpop.f32.mrf.mxu0 }
  0x91   :  { %v82_v6 = vadd.f32 %v120_v4, %v81_v5 }
  0x93   :  { %85 = vst [vmem:[#allocation7] sm:$0xff] %v82_v6 }
  0x94   :  { %96 = dma.vmem_to_hbm [thread:$0]  %s92_s25, 128, %s94_s28, [#allocation4]  }
  0x98   :  { %v83_v7 = vpop.f32.mrf.mxu0 }
  0x99   :  { %197 = dma.done.wait [#allocation4], 128  }
  0x9a   :  { %198 = vsyncadd [#allocation4], 4294967168 }
  0x9b   :  { %101 = vsyncpa [#allocation3], 1 }
  0x9c   :  { %102 = vsyncpa [#allocation6], 1 }
  0x9d   :  { %103 = vsyncpa [#allocation4], 1 }

</bundles_post_ra>
